<compile_context>
chip_gen: v6e
topology: v6e:2x2x1
jax: 0.10.0
libtpu: 0.0.40
codegen_flags: <defaults>
</compile_context>

<pallas_src>
import functools

import jax
import jax.numpy as jnp
from jax.experimental import pallas as pl
from jax.experimental.pallas import tpu as pltpu

_LANES = 128


# ----------------------------- fused Pallas kernel ---------------------------

def _fused_forward_kernel(adj_ref, pool_ref, x_ref, params_ref, o_ref, *, meta, n_conv):
    """meta: tuple of (w_row_off, f_in, f_out, b_row_off) per layer (conv first, then dense)."""
    adj = adj_ref[...]
    p = params_ref[...]          # single packed (R, 128) f32 buffer; static slices below
    h = x_ref[...]

    n_layers = len(meta)
    for li, (rw, f_in, f_out, rb) in enumerate(meta):
        w = p[rw:rw + f_in, :f_out]
        b = p[rb:rb + 1, :f_out]

        if li < n_conv:
            # GCNConv: A_hat @ h @ W + b ; pick the order that keeps the N^2 matmul narrow.
            if f_in <= f_out:
                h = jnp.dot(adj, h, preferred_element_type=jnp.float32)
                h = jnp.dot(h, w, preferred_element_type=jnp.float32) + b
            else:
                h = jnp.dot(h, w, preferred_element_type=jnp.float32)
                h = jnp.dot(adj, h, preferred_element_type=jnp.float32) + b
            h = jnp.maximum(h, 0.0)                      # ReLU after every conv
        else:
            if li == n_conv:
                # global_mean_pool as (G, N) x (N, F) matmul with 1/count weights
                h = jnp.dot(pool_ref[...], h, preferred_element_type=jnp.float32)
            h = jnp.dot(h, w, preferred_element_type=jnp.float32) + b
            if li < n_layers - 1:
                h = jnp.maximum(h, 0.0)                  # no ReLU on final layer
            # dropout is eval-mode identity; batchnorm=False -> no BN

    o_ref[...] = h


def _pallas_forward(x, adj_hat, pool_mat, packed, meta, n_conv):
    num_graphs = pool_mat.shape[0]
    output_dim = meta[-1][2]
    vmem = lambda: pl.BlockSpec(memory_space=pltpu.MemorySpace.VMEM)
    return pl.pallas_call(
        functools.partial(_fused_forward_kernel, meta=meta, n_conv=n_conv),
        out_shape=jax.ShapeDtypeStruct((num_graphs, output_dim), jnp.float32),
        in_specs=[vmem(), vmem(), vmem(), vmem()],
        out_specs=vmem(),
    )(adj_hat, pool_mat, x, packed)


# ----------------------------- graph precompute (fused under jit) ------------

def build_norm_adj(edge_index, num_nodes):
    """A_hat = D^{-1/2} (A + I) D^{-1/2}, matching PyG gcn_norm semantics.

    Directed src->dst edges, duplicate (non-loop) edges SUM, existing self-loops are
    dropped and exactly one unit-weight self-loop per node is added
    (add_remaining_self_loops), degree = self-loop-inclusive in-degree.
    """
    src, dst = edge_index[0], edge_index[1]
    not_loop = (src != dst).astype(jnp.float32)
    a = jnp.zeros((num_nodes, num_nodes), jnp.float32)
    a = a.at[dst, src].add(not_loop)                   # drop existing self-loops
    a = a + jnp.eye(num_nodes, dtype=jnp.float32)      # one unit self-loop per node
    deg = a.sum(axis=1)                                # >= 1
    dinv = jax.lax.rsqrt(deg)
    return dinv[:, None] * a * dinv[None, :]


def build_pool_mat(batch, num_graphs):
    one_hot = (batch[None, :] == jnp.arange(num_graphs)[:, None]).astype(jnp.float32)
    counts = one_hot.sum(axis=1, keepdims=True)
    return one_hot / jnp.maximum(counts, 1.0)


@functools.partial(jax.jit, static_argnames=("num_nodes", "num_graphs", "meta", "n_conv"))
def gcn_forward(x, edge_index, batch, packed, *, num_nodes, num_graphs, meta, n_conv):
    """Single XLA dispatch: precompute A_hat / pool matrix + fused Pallas forward."""
    adj_hat = build_norm_adj(edge_index, num_nodes)
    pool_mat = build_pool_mat(batch, num_graphs)
    return _pallas_forward(x, adj_hat, pool_mat, packed, meta, n_conv)


# ----------------------------- parameter packing ------------------------------

def pack_params(params):
    """Pack every (W, b) into one (R, 128) f32 buffer (R multiple of 8); return buffer + meta."""
    def rup8(n):
        return (n + 7) // 8 * 8

    blocks, meta, row = [], [], 0
    for (w, b) in params["conv"] + params["dense"]:
        f_in, f_out = w.shape
        assert f_out <= _LANES, "feature width must fit one lane tile for this packing"
        rw, wr = row, rup8(f_in)
        blocks.append(jnp.pad(w.astype(jnp.float32),
                              ((0, wr - f_in), (0, _LANES - f_out))))
        row += wr
        rb = row
        blocks.append(jnp.pad(b.astype(jnp.float32).reshape(1, -1),
                              ((0, 7), (0, _LANES - f_out))))
        row += 8
        meta.append((rw, f_in, f_out, rb))
    packed = jnp.concatenate(blocks, axis=0)
    return packed, tuple(meta)


def init_params(key, conv_layers_num, dense_layers_num, model_dim, hidden_size,
                input_dim, output_dim):
    params = {"conv": [], "dense": []}

    def glorot(k, fan_in, fan_out):
        lim = jnp.sqrt(6.0 / (fan_in + fan_out))
        return jax.random.uniform(k, (fan_in, fan_out), jnp.float32, -lim, lim)

    dims = [input_dim] + [model_dim] * conv_layers_num
    for i in range(conv_layers_num):
        key, kw = jax.random.split(key)
        params["conv"].append((glorot(kw, dims[i], dims[i + 1]),
                               jnp.zeros((dims[i + 1],), jnp.float32)))

    ddims = [model_dim] + [hidden_size] * (dense_layers_num - 1) + [output_dim]
    for i in range(dense_layers_num):
        key, kw, kb = jax.random.split(key, 3)
        lim = 1.0 / jnp.sqrt(jnp.float32(ddims[i]))
        w = jax.random.uniform(kw, (ddims[i], ddims[i + 1]), jnp.float32, -lim, lim)
        b = jax.random.uniform(kb, (ddims[i + 1],), jnp.float32, -lim, lim)
        params["dense"].append((w, b))
    return params


# ----------------------------- main ------------------------------------------

if __name__ == "__main__":
    # Hyperparameters (small, consistent with the module's __init__)
    conv_layers_num = 2
    dense_layers_num = 3
    model_dim = 32
    hidden_size = 32
    input_dim = 16
    output_dim = 8
    # dropout=None, batchnorm=False

    num_graphs = 4
    nodes_per_graph = 16
    num_nodes = num_graphs * nodes_per_graph       # 64
    num_edges = 256

    key = jax.random.PRNGKey(0)
    kx, ke, kp = jax.random.split(key, 3)

    x = jax.random.normal(kx, (num_nodes, input_dim), jnp.float32)
    edge_index = jax.random.randint(ke, (2, num_edges), 0, num_nodes, jnp.int32)
    batch = jnp.repeat(jnp.arange(num_graphs, dtype=jnp.int32), nodes_per_graph)

    params = init_params(kp, conv_layers_num, dense_layers_num, model_dim,
                         hidden_size, input_dim, output_dim)
    packed, meta = pack_params(params)             # packed once; reused across forwards

    out = gcn_forward(x, edge_index, batch, packed,
                      num_nodes=num_nodes, num_graphs=num_graphs,
                      meta=meta, n_conv=conv_layers_num)
    out = jax.block_until_ready(out)
    assert out.shape == (num_graphs, output_dim), out.shape
    assert jnp.all(jnp.isfinite(out))
    print("KERNEL_OK")
</pallas_src>

<mosaic_0001>
module attributes {stable_mosaic.version = 11 : i64} {
  func.func private @main(%arg0: i32) attributes {dimension_semantics = [#tpu.dimension_semantics<core_parallel>], iteration_bounds = array<i64: 2>, tpu.core_type = #tpu.core_type<sc_scalar_subcore>, window_params = []} {
    return
  }
}

module attributes {stable_mosaic.version = 11 : i64} {
  func.func private @main(%arg0: i32) attributes {dimension_semantics = [#tpu.dimension_semantics<core_parallel>], iteration_bounds = array<i64: 2>, tpu.core_type = #tpu.core_type<sc_scalar_subcore>, window_params = []} {
    return
  }
}

module attributes {stable_mosaic.version = 11 : i64} {
  func.func @_fused_forward_kernel(%arg0: memref<64x64xf32, #tpu.memory_space<vmem>>, %arg1: memref<4x64xf32, #tpu.memory_space<vmem>>, %arg2: memref<64x16xf32, #tpu.memory_space<vmem>>, %arg3: memref<184x128xf32, #tpu.memory_space<vmem>>, %arg4: memref<4x8xf32, #tpu.memory_space<vmem>>) attributes {dimension_semantics = [], scalar_prefetch = 0 : i64, scratch_operands = 0 : i64, tpu.core_type = #tpu.core_type<tc>} {
    %c0 = arith.constant 0 : index
    %c0_0 = arith.constant 0 : index
    %0 = vector.load %arg0[%c0, %c0_0] : memref<64x64xf32, #tpu.memory_space<vmem>>, vector<64x64xf32>
    %c0_1 = arith.constant 0 : index
    %c0_2 = arith.constant 0 : index
    %1 = vector.load %arg3[%c0_1, %c0_2] : memref<184x128xf32, #tpu.memory_space<vmem>>, vector<184x128xf32>
    %c0_3 = arith.constant 0 : index
    %c0_4 = arith.constant 0 : index
    %2 = vector.load %arg2[%c0_3, %c0_4] : memref<64x16xf32, #tpu.memory_space<vmem>>, vector<64x16xf32>
    %3 = vector.extract_strided_slice %1 {offsets = [0, 0], sizes = [16, 32], strides = [1, 1]} : vector<184x128xf32> to vector<16x32xf32>
    %4 = vector.extract_strided_slice %1 {offsets = [16, 0], sizes = [1, 32], strides = [1, 1]} : vector<184x128xf32> to vector<1x32xf32>
    %cst = arith.constant dense<0.000000e+00> : vector<64x16xf32>
    %5 = tpu.matmul %0, %2, %cst {dimension_numbers = #tpu.dot_dimension_numbers<[1], [0], [0], [1], [0, 0, 1, 1], [], []>} : vector<64x64xf32>, vector<64x16xf32>, vector<64x16xf32> -> vector<64x16xf32>
    %cst_5 = arith.constant dense<0.000000e+00> : vector<64x32xf32>
    %6 = tpu.matmul %5, %3, %cst_5 {dimension_numbers = #tpu.dot_dimension_numbers<[1], [0], [0], [1], [0, 0, 1, 1], [], []>} : vector<64x16xf32>, vector<16x32xf32>, vector<64x32xf32> -> vector<64x32xf32>
    %7 = vector.broadcast %4 : vector<1x32xf32> to vector<64x32xf32>
    %8 = arith.addf %6, %7 : vector<64x32xf32>
    %cst_6 = arith.constant 0.000000e+00 : f32
    %9 = vector.broadcast %cst_6 : f32 to vector<64x32xf32>
    %10 = arith.maximumf %8, %9 : vector<64x32xf32>
    %11 = vector.extract_strided_slice %1 {offsets = [24, 0], sizes = [32, 32], strides = [1, 1]} : vector<184x128xf32> to vector<32x32xf32>
    %12 = vector.extract_strided_slice %1 {offsets = [56, 0], sizes = [1, 32], strides = [1, 1]} : vector<184x128xf32> to vector<1x32xf32>
    %cst_7 = arith.constant dense<0.000000e+00> : vector<64x32xf32>
    %13 = tpu.matmul %0, %10, %cst_7 {dimension_numbers = #tpu.dot_dimension_numbers<[1], [0], [0], [1], [0, 0, 1, 1], [], []>} : vector<64x64xf32>, vector<64x32xf32>, vector<64x32xf32> -> vector<64x32xf32>
    %cst_8 = arith.constant dense<0.000000e+00> : vector<64x32xf32>
    %14 = tpu.matmul %13, %11, %cst_8 {dimension_numbers = #tpu.dot_dimension_numbers<[1], [0], [0], [1], [0, 0, 1, 1], [], []>} : vector<64x32xf32>, vector<32x32xf32>, vector<64x32xf32> -> vector<64x32xf32>
    %15 = vector.broadcast %12 : vector<1x32xf32> to vector<64x32xf32>
    %16 = arith.addf %14, %15 : vector<64x32xf32>
    %cst_9 = arith.constant 0.000000e+00 : f32
    %17 = vector.broadcast %cst_9 : f32 to vector<64x32xf32>
    %18 = arith.maximumf %16, %17 : vector<64x32xf32>
    %19 = vector.extract_strided_slice %1 {offsets = [64, 0], sizes = [32, 32], strides = [1, 1]} : vector<184x128xf32> to vector<32x32xf32>
    %20 = vector.extract_strided_slice %1 {offsets = [96, 0], sizes = [1, 32], strides = [1, 1]} : vector<184x128xf32> to vector<1x32xf32>
    %c0_10 = arith.constant 0 : index
    %c0_11 = arith.constant 0 : index
    %21 = vector.load %arg1[%c0_10, %c0_11] : memref<4x64xf32, #tpu.memory_space<vmem>>, vector<4x64xf32>
    %cst_12 = arith.constant dense<0.000000e+00> : vector<4x32xf32>
    %22 = tpu.matmul %21, %18, %cst_12 {dimension_numbers = #tpu.dot_dimension_numbers<[1], [0], [0], [1], [0, 0, 1, 1], [], []>} : vector<4x64xf32>, vector<64x32xf32>, vector<4x32xf32> -> vector<4x32xf32>
    %cst_13 = arith.constant dense<0.000000e+00> : vector<4x32xf32>
    %23 = tpu.matmul %22, %19, %cst_13 {dimension_numbers = #tpu.dot_dimension_numbers<[1], [0], [0], [1], [0, 0, 1, 1], [], []>} : vector<4x32xf32>, vector<32x32xf32>, vector<4x32xf32> -> vector<4x32xf32>
    %24 = vector.broadcast %20 : vector<1x32xf32> to vector<4x32xf32>
    %25 = arith.addf %23, %24 : vector<4x32xf32>
    %cst_14 = arith.constant 0.000000e+00 : f32
    %26 = vector.broadcast %cst_14 : f32 to vector<4x32xf32>
    %27 = arith.maximumf %25, %26 : vector<4x32xf32>
    %28 = vector.extract_strided_slice %1 {offsets = [104, 0], sizes = [32, 32], strides = [1, 1]} : vector<184x128xf32> to vector<32x32xf32>
    %29 = vector.extract_strided_slice %1 {offsets = [136, 0], sizes = [1, 32], strides = [1, 1]} : vector<184x128xf32> to vector<1x32xf32>
    %cst_15 = arith.constant dense<0.000000e+00> : vector<4x32xf32>
    %30 = tpu.matmul %27, %28, %cst_15 {dimension_numbers = #tpu.dot_dimension_numbers<[1], [0], [0], [1], [0, 0, 1, 1], [], []>} : vector<4x32xf32>, vector<32x32xf32>, vector<4x32xf32> -> vector<4x32xf32>
    %31 = vector.broadcast %29 : vector<1x32xf32> to vector<4x32xf32>
    %32 = arith.addf %30, %31 : vector<4x32xf32>
    %cst_16 = arith.constant 0.000000e+00 : f32
    %33 = vector.broadcast %cst_16 : f32 to vector<4x32xf32>
    %34 = arith.maximumf %32, %33 : vector<4x32xf32>
    %35 = vector.extract_strided_slice %1 {offsets = [144, 0], sizes = [32, 8], strides = [1, 1]} : vector<184x128xf32> to vector<32x8xf32>
    %36 = vector.extract_strided_slice %1 {offsets = [176, 0], sizes = [1, 8], strides = [1, 1]} : vector<184x128xf32> to vector<1x8xf32>
    %cst_17 = arith.constant dense<0.000000e+00> : vector<4x8xf32>
    %37 = tpu.matmul %34, %35, %cst_17 {dimension_numbers = #tpu.dot_dimension_numbers<[1], [0], [0], [1], [0, 0, 1, 1], [], []>} : vector<4x32xf32>, vector<32x8xf32>, vector<4x8xf32> -> vector<4x8xf32>
    %38 = vector.broadcast %36 : vector<1x8xf32> to vector<4x8xf32>
    %39 = arith.addf %37, %38 : vector<4x8xf32>
    %c0_18 = arith.constant 0 : index
    %c0_19 = arith.constant 0 : index
    %40 = vector.load %arg4[%c0_18, %c0_19] : memref<4x8xf32, #tpu.memory_space<vmem>>, vector<4x8xf32>
    tpu.vector_store %arg4[%c0_18, %c0_19], %39 {strides = array<i32>} : memref<4x8xf32, #tpu.memory_space<vmem>>, vector<4x8xf32>,
    return
  }
}

</mosaic_0001>

<bundles_post_ra>
// kernel: gcn_forward.1
= control target key start
LH: loop header
LB: loop body
LE: loop exit
PB: predicated region body
PF: predicated region fallthrough
CT: control target
= control target key end

     0   :  { %vm57_vm0 = vcmask 523264   ;;  %s1424_s0 = inlined_call_operand.vmem [shape: f32[64,64], index: 0, kind: input, shape index: {}]   ;;  %s1425_s1 = inlined_call_operand.vmem [shape: f32[4,64], index: 1, kind: input, shape index: {}]   ;;  %s1426_s2 = inlined_call_operand.vmem [shape: f32[64,16], index: 2, kind: input, shape index: {}]   ;;  %s1427_s3 = inlined_call_operand.vmem [shape: f32[184,128], index: 3, kind: input, shape index: {}]   ;;  %s1428_s4 = inlined_call_operand.hbm [shape: f32[4,8], index: 4, kind: output, shape index: {}]  }
   0x1   :  { %v56_v0 = vld [vmem:[%s1426_s2 + $0x38] sm:$0xff]  ;;  %v55_v1 = vld [vmem:[%s1426_s2 + $0x30] sm:$0xff]  ;;  %v54_v2 = vld [vmem:[%s1426_s2 + $0x28] sm:$0xff] }
   0x2   :  { %1013 = vmatprep.subr.mxu0 %v56_v0  ;;  %v18_v3 = vld [vmem:[%s1424_s0] sm:$0xff] }
   0x3   :  { %1014 = vmatpush3.msra.mxu0 %v56_v0  ;;  %1029 = vmatprep.mubr.msk.f32.mxu0 %vm57_vm0, %v18_v3  ;;  %v53_v4 = vld [vmem:[%s1426_s2 + $0x20] sm:$0xff] }
   0x4   :  { %1015 = vmatprep.subr.mxu0 %v55_v1 }
   0x5   :  { %1016 = vmatpush3.msra.mxu0 %v55_v1 }
   0x6   :  { %1017 = vmatprep.subr.mxu0 %v54_v2 }
   0x7   :  { %9 = vsyncpa [#allocation3], 0  ;;  %1018 = vmatpush3.msra.mxu0 %v54_v2  ;;  %v52_v5 = vld [vmem:[%s1426_s2 + $0x18] sm:$0xff]  ;;  %v51_v6 = vld [vmem:[%s1426_s2 + $0x10] sm:$0xff]  ;;  %vm191_vm1 = vcmask 130048   ;;  %v187_v29 = vlaneseq  ;;  %vm438_vm2 = vcmask 261120  }
   0x8   :  { %1019 = vmatprep.subr.mxu0 %v53_v4  ;;  %v50_v7 = vld [vmem:[%s1426_s2 + $0x8] sm:$0xff]  ;;  %v49_v8 = vld [vmem:[%s1426_s2] sm:$0xff]  ;;  %v1246_v10 = vld [vmem:[%s1424_s0 + $0x10] sm:$0xff]  ;;  %vm1183_vm3 = vmmov 0   ;;  %s1184_s11 = smov [#allocation2]   ;;  %vm883_vm4 = vcmask 60416  }
   0x9   :  { %1020 = vmatpush3.msra.mxu0 %v53_v4  ;;  %v1241_v9 = vld [vmem:[%s1424_s0 + $0x8] sm:$0xff]  ;;  %v1255_v11 = vld [vmem:[%s1424_s0 + $0x18] sm:$0xff]  ;;  %v1260_v12 = vld [vmem:[%s1424_s0 + $0x20] sm:$0xff]  ;;  %v188_v32 = vshrl.u32 %v187_v29, 7  ;;  %s891_s12 = sshll.u32 %s1184_s11, 4  ;;  %s892_s12 = int_to_ptr.vmem [resolvable:$true] %s891_s12 }
   0xa   :  { %1021 = vmatprep.subr.mxu0 %v52_v5  ;;  %v1269_v13 = vld [vmem:[%s1424_s0 + $0x28] sm:$0xff]  ;;  %v1274_v14 = vld [vmem:[%s1424_s0 + $0x30] sm:$0xff]  ;;  %v1283_v15 = vld [vmem:[%s1424_s0 + $0x38] sm:$0xff]  ;;  %s1160_s13 = scalar_lea.vmem %s892_s12, 64  ;;  %p1165_p1 = scmp.lt.s32.totalorder %s892_s12, %s892_s12 }
   0xb   :  { %1022 = vmatpush3.msra.mxu0 %v52_v5  ;;  %v27_v16 = vld [vmem:[%s1427_s3 + $0x8] sm:$0xff]  ;;  %v26_v17 = vld [vmem:[%s1427_s3] sm:$0xff]  ;;  %v32_v26 = vld [vmem:[%s1427_s3 + $0x30] sm:$0xff]  ;;  %v1303_v35 = vsub.s32 0, %v188_v32  ;;  %p1161_p0 = scmp.ne.s32.totalorder %s892_s12, %s1160_s13  ;;  %p1166_p2 = scmp.lt.s32.totalorder %s1160_s13, %s1160_s13 }
   0xc   :  { %1023 = vmatprep.subr.mxu0 %v51_v6  ;;  %1041 = vmatprep.subr.mxu1 %v27_v16  ;;  %v31_v27 = vld [vmem:[%s1427_s3 + $0x28] sm:$0xff]  ;;  %v30_v28 = vld [vmem:[%s1427_s3 + $0x20] sm:$0xff]  ;;  %v28_v36 = vld [vmem:[%s1427_s3 + $0x10] sm:$0xff] }
   0xd   :  { %1024 = vmatpush3.msra.mxu0 %v51_v6  ;;  %1042 = vmatpush3.msra.mxu1 %v27_v16  ;;  %v190_v39 = vrot.slane %v28_v36, %v1303_v35  ;;  %v29_v58 = vld [vmem:[%s1427_s3 + $0x18] sm:$0xff]  ;;  %v36_v32 = vld [vmem:[%s1427_s3 + $0x50] sm:$0xff]  ;;  %v42_v36 = vld [vmem:[%s1427_s3 + $0x80] sm:$0xff]  ;;  %p1167_p3 = por %p1166_p2, %p1165_p1 }
   0xe   :  { %1025 = vmatprep.subr.mxu0 %v50_v7  ;;  %1043 = vmatprep.subr.mxu1 %v26_v17 }
   0xf   :  { %1026 = vmatpush3.msra.mxu0 %v50_v7  ;;  %1044 = vmatpush3.msra.mxu1 %v26_v17  ;;  %p1168_p4 = pnand %p1167_p3, %p1161_p0 }
  0x10   :  { %1027 = vmatprep.subr.mxu0 %v49_v8 }
  0x11   :  { %1028 = vmatpush3.msra.mxu0 %v49_v8  ;;  %v33_v8 = vld [vmem:[%s1427_s3 + $0x38] sm:$0xff] }
  0x12   :  { %1030 = vmatmul.mubr.msk.f32.vlgmr.msra.gmra.mxu0 %vm57_vm0, %v1241_v9  ;;  %1085 = vmatprep.subr.mxu0 %v32_v26 }
  0x13   :  { %1032 = vmatprep.mubr.msk.f32.mxu0 %vm57_vm0, %v1246_v10  ;;  %1086 = vmatpush3.msra.mxu0 %v32_v26 }
  0x14   :  { %1087 = vmatprep.subr.mxu0 %v31_v27 }
  0x15   :  { %1088 = vmatpush3.msra.mxu0 %v31_v27 }
  0x16   :  { %1033 = vmatmul.mubr.msk.f32.gmra.mxu0 %vm57_vm0, %v1255_v11  ;;  %1089 = vmatprep.subr.mxu0 %v30_v28 }
  0x17   :  { %1035 = vmatprep.mubr.msk.f32.mxu0 %vm57_vm0, %v1260_v12  ;;  %1090 = vmatpush3.msra.mxu0 %v30_v28 }
  0x18   :  { %1091 = vmatprep.subr.mxu0 %v29_v58 }
  0x19   :  { %1092 = vmatpush3.msra.mxu0 %v29_v58  ;;  %v48_v58 = vld [vmem:[%s1427_s3 + $0xb0] sm:$0xff] }
  0x1a   :  { %1036 = vmatmul.mubr.msk.f32.gmra.mxu0 %vm57_vm0, %v1269_v13 }
  0x1b   :  { %1038 = vmatprep.mubr.msk.f32.mxu0 %vm57_vm0, %v1274_v14 }
  0x1e   :  { %1039 = vmatmul.mubr.msk.f32.gmra.mxu0 %vm57_vm0, %v1283_v15 }
  0xd2   :  { %v1031_v18 = vpop.f32.mrf.mxu0 }
  0xd4   :  { %v148_v19 = vpop.f32.mrf.mxu0 }
  0xd5   :  { %1045 = vmatprep.mubr.msk.f32.mxu1 %vm191_vm1, %v148_v19 }
  0xd6   :  { %v1034_v20 = vpop.f32.mrf.mxu0  ;;  %1046 = vmatmul.mubr.msk.f32.vlgmr.msra.gmra.mxu1 %vm191_vm1, %v1031_v18 }
  0xd8   :  { %v158_v21 = vpop.f32.mrf.mxu0 }
  0xd9   :  { %1048 = vmatprep.mubr.msk.f32.mxu1 %vm191_vm1, %v158_v21 }
  0xda   :  { %v1037_v22 = vpop.f32.mrf.mxu0  ;;  %1049 = vmatmul.mubr.msk.f32.gmra.mxu1 %vm191_vm1, %v1034_v20 }
  0xdc   :  { %v168_v23 = vpop.f32.mrf.mxu0 }
  0xdd   :  { %1051 = vmatprep.mubr.msk.f32.mxu1 %vm191_vm1, %v168_v23 }
  0xde   :  { %v1040_v24 = vpop.f32.mrf.mxu0  ;;  %1052 = vmatmul.mubr.msk.f32.gmra.mxu1 %vm191_vm1, %v1037_v22 }
  0xe0   :  { %v178_v25 = vpop.f32.mrf.mxu0 }
  0xe1   :  { %1054 = vmatprep.mubr.msk.f32.mxu1 %vm191_vm1, %v178_v25 }
  0xe2   :  { %1055 = vmatmul.mubr.msk.f32.gmra.mxu1 %vm191_vm1, %v1040_v24 }
  0xe3   :  { %1073 = vmatprep.mubr.msk.f32.mxu1 %vm57_vm0, %v18_v3  ;;  %v1182_v3 = vmov 0.0  }
  0xe4   :  { %1135 = vmatprep.subr.mxu0 %v1182_v3 }
 0x196   :  { %v1047_v30 = vpop.f32.mrf.mxu1 }
 0x197   :  { %v288_v52 = vadd.f32 %v1047_v30, %v190_v39  ;;  %v576_v30 = vld [vmem:[%s1425_s1] sm:$0xf] }
 0x198   :  { %v282_v31 = vpop.f32.mrf.mxu1 }
 0x199   :  { %v283_v54 = vadd.f32 %v282_v31, %v190_v39  ;;  %v322_v56 = vmax.f32 %v288_v52, 0.0  ;;  %v37_v31 = vld [vmem:[%s1427_s3 + $0x58] sm:$0xff]  ;;  %v43_v52 = vld [vmem:[%s1427_s3 + $0x88] sm:$0xff] }
 0x19a   :  { %v1050_v33 = vpop.f32.mrf.mxu1 }
 0x19b   :  { %v298_v48 = vadd.f32 %v1050_v33, %v190_v39  ;;  %v321_v57 = vmax.f32 %v283_v54, 0.0  ;;  %v35_v33 = vld [vmem:[%s1427_s3 + $0x48] sm:$0xff] }
 0x19c   :  { %v292_v34 = vpop.f32.mrf.mxu1 }
 0x19d   :  { %v293_v50 = vadd.f32 %v292_v34, %v190_v39  ;;  %v324_v53 = vmax.f32 %v298_v48, 0.0  ;;  %v34_v34 = vld [vmem:[%s1427_s3 + $0x40] sm:$0xff] }
 0x19e   :  { %v1053_v37 = vpop.f32.mrf.mxu1 }
 0x19f   :  { %v308_v43 = vadd.f32 %v1053_v37, %v190_v39  ;;  %v323_v55 = vmax.f32 %v293_v50, 0.0  ;;  %v41_v37 = vld [vmem:[%s1427_s3 + $0x78] sm:$0xff] }
 0x1a0   :  { %v302_v38 = vpop.f32.mrf.mxu1  ;;  %v45_v50 = vld [vmem:[%s1427_s3 + $0x98] sm:$0xff] }
 0x1a1   :  { %v303_v46 = vadd.f32 %v302_v38, %v190_v39  ;;  %v326_v49 = vmax.f32 %v308_v43, 0.0  ;;  %v40_v38 = vld [vmem:[%s1427_s3 + $0x70] sm:$0xff]  ;;  %v38_v43 = vld [vmem:[%s1427_s3 + $0x60] sm:$0xff] }
 0x1a2   :  { %v1056_v40 = vpop.f32.mrf.mxu1 }
 0x1a3   :  { %v318_v41 = vadd.f32 %v1056_v40, %v190_v39  ;;  %v325_v51 = vmax.f32 %v303_v46, 0.0 }
 0x1a4   :  { %v312_v42 = vpop.f32.mrf.mxu1 }
 0x1a5   :  { %v328_v44 = vmax.f32 %v318_v41, 0.0  ;;  %v313_v45 = vadd.f32 %v312_v42, %v190_v39  ;;  %v39_v41 = vld [vmem:[%s1427_s3 + $0x68] sm:$0xff] }
 0x1a6   :  { %v47_v42 = vld [vmem:[%s1427_s3 + $0xa8] sm:$0xff] }
 0x1a7   :  { %v327_v47 = vmax.f32 %v313_v45, 0.0  ;;  %1057 = vmatprep.subr.mxu1 %v328_v44 }
 0x1a8   :  { %1058 = vmatpush3.msra.mxu1 %v328_v44  ;;  %v653_v44 = vrot.slane %v38_v43, %v1303_v35 }
 0x1a9   :  { %1059 = vmatprep.subr.mxu1 %v327_v47 }
 0x1aa   :  { %1060 = vmatpush3.msra.mxu1 %v327_v47 }
 0x1ab   :  { %1061 = vmatprep.subr.mxu1 %v326_v49 }
 0x1ac   :  { %1062 = vmatpush3.msra.mxu1 %v326_v49  ;;  %v46_v49 = vld [vmem:[%s1427_s3 + $0xa0] sm:$0xff] }
 0x1ad   :  { %1063 = vmatprep.subr.mxu1 %v325_v51 }
 0x1ae   :  { %1064 = vmatpush3.msra.mxu1 %v325_v51  ;;  %v44_v51 = vld [vmem:[%s1427_s3 + $0x90] sm:$0xff] }
 0x1af   :  { %1065 = vmatprep.subr.mxu1 %v324_v53 }
 0x1b0   :  { %1066 = vmatpush3.msra.mxu1 %v324_v53  ;;  %v731_v53 = vrot.slane %v43_v52, %v1303_v35 }
 0x1b1   :  { %1067 = vmatprep.subr.mxu1 %v323_v55 }
 0x1b2   :  { %1068 = vmatpush3.msra.mxu1 %v323_v55 }
 0x1b3   :  { %1069 = vmatprep.subr.mxu1 %v322_v56 }
 0x1b4   :  { %1070 = vmatpush3.msra.mxu1 %v322_v56 }
 0x1b5   :  { %1071 = vmatprep.subr.mxu1 %v321_v57 }
 0x1b6   :  { %1072 = vmatpush3.msra.mxu1 %v321_v57 }
 0x1b7   :  { %1074 = vmatmul.mubr.msk.f32.vlgmr.msra.gmra.mxu1 %vm57_vm0, %v1241_v9  ;;  %1105 = vmatprep.subr.mxu1 %v1182_v3 }
 0x1b8   :  { %1076 = vmatprep.mubr.msk.f32.mxu1 %vm57_vm0, %v1246_v10 }
 0x1bb   :  { %1077 = vmatmul.mubr.msk.f32.gmra.mxu1 %vm57_vm0, %v1255_v11  ;;  %v437_v11 = vrot.slane %v33_v8, %v1303_v35 }
 0x1bc   :  { %1079 = vmatprep.mubr.msk.f32.mxu1 %vm57_vm0, %v1260_v12 }
 0x1bf   :  { %1080 = vmatmul.mubr.msk.f32.gmra.mxu1 %vm57_vm0, %v1269_v13 }
 0x1c0   :  { %1082 = vmatprep.mubr.msk.f32.mxu1 %vm57_vm0, %v1274_v14 }
 0x1c3   :  { %1083 = vmatmul.mubr.msk.f32.gmra.mxu1 %vm57_vm0, %v1283_v15 }
 0x1c4   :  { %1121 = vmatprep.mubr.msk.f32.mxu1 %vm1183_vm3, %v1182_v3 }
 0x277   :  { %v1075_v59 = vpop.f32.mrf.mxu1 }
 0x279   :  { %v395_v60 = vpop.f32.mrf.mxu1 }
 0x27a   :  { %1093 = vmatprep.mubr.msk.f32.mxu0 %vm438_vm2, %v395_v60 }
 0x27b   :  { %v1078_v61 = vpop.f32.mrf.mxu1  ;;  %1094 = vmatmul.mubr.msk.f32.vlgmr.msra.gmra.mxu0 %vm438_vm2, %v1075_v59  ;;  %v809_v59 = vrot.slane %v48_v58, %v1303_v35 }
 0x27c   :  { %1136 = vmatpush3.msra.mxu0 %v42_v36 }
 0x27d   :  { %v405_v62 = vpop.f32.mrf.mxu1  ;;  %1137 = vmatprep.subr.mxu0 %v1182_v3 }
 0x27e   :  { %1096 = vmatprep.mubr.msk.f32.mxu0 %vm438_vm2, %v405_v62  ;;  %1138 = vmatpush3.msra.mxu0 %v41_v37 }
 0x27f   :  { %v1081_v63 = vpop.f32.mrf.mxu1  ;;  %1097 = vmatmul.mubr.msk.f32.gmra.mxu0 %vm438_vm2, %v1078_v61  ;;  %1139 = vmatprep.subr.mxu0 %v1182_v3 }
 0x280   :  { %1140 = vmatpush3.msra.mxu0 %v40_v38 }
 0x281   :  { %v415_v0 = vpop.f32.mrf.mxu1  ;;  %1141 = vmatprep.subr.mxu0 %v1182_v3 }
 0x282   :  { %1099 = vmatprep.mubr.msk.f32.mxu0 %vm438_vm2, %v415_v0  ;;  %1142 = vmatpush3.msra.mxu0 %v39_v41 }
 0x283   :  { %v1084_v1 = vpop.f32.mrf.mxu1  ;;  %1100 = vmatmul.mubr.msk.f32.gmra.mxu0 %vm438_vm2, %v1081_v63 }
 0x285   :  { %v425_v2 = vpop.f32.mrf.mxu1 }
 0x286   :  { %1102 = vmatprep.mubr.msk.f32.mxu0 %vm438_vm2, %v425_v2 }
 0x287   :  { %1103 = vmatmul.mubr.msk.f32.gmra.mxu0 %vm438_vm2, %v1084_v1 }
 0x288   :  { %1143 = vmatprep.mubr.msk.f32.mxu0 %vm1183_vm3, %v1182_v3 }
 0x33b   :  { %v1095_v4 = vpop.f32.mrf.mxu0 }
 0x33c   :  { %v535_v24 = vadd.f32 %v1095_v4, %v437_v11 }
 0x33d   :  { %v529_v5 = vpop.f32.mrf.mxu0 }
 0x33e   :  { %v530_v26 = vadd.f32 %v529_v5, %v437_v11  ;;  %v569_v28 = vmax.f32 %v535_v24, 0.0 }
 0x33f   :  { %v1098_v6 = vpop.f32.mrf.mxu0 }
 0x340   :  { %v545_v20 = vadd.f32 %v1098_v6, %v437_v11  ;;  %v568_v29 = vmax.f32 %v530_v26, 0.0 }
 0x341   :  { %v539_v7 = vpop.f32.mrf.mxu0 }
 0x342   :  { %v540_v22 = vadd.f32 %v539_v7, %v437_v11  ;;  %v571_v25 = vmax.f32 %v545_v20, 0.0 }
 0x343   :  { %v1101_v9 = vpop.f32.mrf.mxu0 }
 0x344   :  { %v555_v15 = vadd.f32 %v1101_v9, %v437_v11  ;;  %v570_v27 = vmax.f32 %v540_v22, 0.0 }
 0x345   :  { %v549_v10 = vpop.f32.mrf.mxu0 }
 0x346   :  { %v550_v18 = vadd.f32 %v549_v10, %v437_v11  ;;  %v573_v21 = vmax.f32 %v555_v15, 0.0 }
 0x347   :  { %v1104_v12 = vpop.f32.mrf.mxu0 }
 0x348   :  { %v565_v13 = vadd.f32 %v1104_v12, %v437_v11  ;;  %v572_v23 = vmax.f32 %v550_v18, 0.0 }
 0x349   :  { %v559_v14 = vpop.f32.mrf.mxu0 }
 0x34a   :  { %v575_v16 = vmax.f32 %v565_v13, 0.0  ;;  %v560_v17 = vadd.f32 %v559_v14, %v437_v11 }
 0x34c   :  { %v574_v19 = vmax.f32 %v560_v17, 0.0  ;;  %1106 = vmatpush3.msra.mxu1 %v575_v16 }
 0x34d   :  { %1107 = vmatprep.subr.mxu1 %v1182_v3 }
 0x34e   :  { %1108 = vmatpush3.msra.mxu1 %v574_v19 }
 0x34f   :  { %1109 = vmatprep.subr.mxu1 %v1182_v3 }
 0x350   :  { %1110 = vmatpush3.msra.mxu1 %v573_v21 }
 0x351   :  { %1111 = vmatprep.subr.mxu1 %v1182_v3 }
 0x352   :  { %1112 = vmatpush3.msra.mxu1 %v572_v23 }
 0x353   :  { %1113 = vmatprep.subr.mxu1 %v1182_v3 }
 0x354   :  { %1114 = vmatpush3.msra.mxu1 %v571_v25 }
 0x355   :  { %1115 = vmatprep.subr.mxu1 %v1182_v3 }
 0x356   :  { %1116 = vmatpush3.msra.mxu1 %v570_v27 }
 0x357   :  { %1117 = vmatprep.subr.mxu1 %v1182_v3 }
 0x358   :  { %1118 = vmatpush3.msra.mxu1 %v569_v28 }
 0x359   :  { %1119 = vmatprep.subr.mxu1 %v1182_v3 }
 0x35a   :  { %1120 = vmatpush3.msra.mxu1 %v568_v29 }
 0x35b   :  { %1122 = vmatmul.mubr.msk.f32.vlgmr.msra.gmra.mxu1 %vm57_vm0, %v576_v30  ;;  %1124 = vmatprep.subr.mxu1 %v1182_v3 }
 0x35c   :  { %1125 = vmatpush3.msra.mxu1 %v37_v31  ;;  %1132 = vmatprep.mubr.msk.f32.mxu1 %vm1183_vm3, %v1182_v3 }
 0x35d   :  { %1126 = vmatprep.subr.mxu1 %v1182_v3 }
 0x35e   :  { %1127 = vmatpush3.msra.mxu1 %v36_v32 }
 0x35f   :  { %1128 = vmatprep.subr.mxu1 %v1182_v3 }
 0x360   :  { %1129 = vmatpush3.msra.mxu1 %v35_v33 }
 0x361   :  { %1130 = vmatprep.subr.mxu1 %v1182_v3 }
 0x362   :  { %1131 = vmatpush3.msra.mxu1 %v34_v34 }
 0x363   :  { %1146 = vmatprep.subr.mxu1 %v1182_v3 }
 0x41b   :  { %v646_v39 = vpop.f32.mrf.mxu1 }
 0x41c   :  { %1133 = vmatmul.mubr.msk.f32.vlgmr.msra.gmra.mxu1 %vm438_vm2, %v646_v39 }
 0x41d   :  { %v1123_v40 = vpop.f32.mrf.mxu1  ;;  %1154 = vmatprep.mubr.msk.f32.mxu1 %vm1183_vm3, %v1182_v3  ;;  %1147 = vmatpush3.msra.mxu1 %v47_v42 }
 0x41e   :  { %1148 = vmatprep.subr.mxu1 %v1182_v3 }
 0x41f   :  { %1149 = vmatpush3.msra.mxu1 %v46_v49 }
 0x420   :  { %1150 = vmatprep.subr.mxu1 %v1182_v3 }
 0x421   :  { %1151 = vmatpush3.msra.mxu1 %v45_v50 }
 0x422   :  { %1152 = vmatprep.subr.mxu1 %v1182_v3 }
 0x423   :  { %1153 = vmatpush3.msra.mxu1 %v44_v51 }
 0x4dc   :  { %v723_v45 = vpop.f32.mrf.mxu1 }
 0x4dd   :  { %v724_v46 = vadd.f32 %v723_v45, %v653_v44 }
 0x4de   :  { %v1134_v47 = vpop.f32.mrf.mxu1 }
 0x4df   :  { %v727_v48 = vmax.f32 %v724_v46, 0.0 }
 0x4e1   :  { %1144 = vmatmul.mubr.msk.f32.vlgmr.msra.gmra.mxu0 %vm438_vm2, %v727_v48 }
 0x5a1   :  { %v801_v54 = vpop.f32.mrf.mxu0 }
 0x5a2   :  { %v802_v55 = vadd.f32 %v801_v54, %v731_v53 }
 0x5a3   :  { %v1145_v56 = vpop.f32.mrf.mxu0 }
 0x5a4   :  { %v805_v57 = vmax.f32 %v802_v55, 0.0 }
 0x5a6   :  { %1155 = vmatmul.mubr.msk.f32.vlgmr.msra.gmra.mxu1 %vm438_vm2, %v805_v57 }
 0x666   :  { %v879_v60 = vpop.f32.mrf.mxu1 }
 0x667   :  { %v880_v61 = vadd.f32 %v879_v60, %v809_v59 }
 0x668   :  { %v1156_v62 = vpop.f32.mrf.mxu1 }
 0x669   :  { %884 = vst.msk [vmem:[#allocation2] sm:$0xf] %vm883_vm4, %v880_v61 }
 0x66a   :  { %1171 = shalt.err (!%p1168_p4)
}
 0x66b   :  { %894 = dma.vmem_to_hbm [thread:$0]  %s892_s12, 64, %s1428_s4, [#allocation3]  }
 0x66c   :  { %1180 = dma.done.wait [#allocation3], 64  }
 0x66d   :  { %1181 = vsyncadd [#allocation3], 4294967232 }
 0x66e   :  { %898 = vsyncpa [#allocation3], 1 }

</bundles_post_ra>
